<compile_context>
chip_gen: v6e
topology: v6e:2x2x1
jax: 0.10.0
libtpu: 0.0.40
codegen_flags: <defaults>
</compile_context>

<pallas_src>
import jax
import jax.numpy as jnp
from jax.experimental import pallas as pl
from jax.experimental.pallas import tpu as pltpu


def _copy_kernel(x_ref, o_ref):
    # Flatten has no arithmetic; the kernel is a single lane-dense copy pass.
    o_ref[...] = x_ref[...]


def _sublane_multiple(dtype) -> int:
    # Rows per vreg: 8 for 32-bit, 16 for 16-bit, 32 for 8-bit dtypes.
    itemsize = jnp.dtype(dtype).itemsize
    return 8 * max(1, 4 // itemsize)


def _widest_lane_dim(total: int, cap: int = 32768):
    # Largest multiple of 128 that divides `total`, capped at `cap`.
    if total % 128 != 0:
        return None
    best = 128
    for c in range(256, min(cap, total) + 1, 128):
        if total % c == 0:
            best = c
    return best


def flatten_3_4(x, *, vmem_budget_bytes=12 * 1024 * 1024):
    """Forward of `flat`: nn.Flatten(3, 4) on a 5-D tensor (N, C, D, H, W)."""
    assert x.ndim == 5, f"Flatten(3, 4) expects a 5-D input, got {x.shape}"
    n0, n1, n2, d3, d4 = x.shape
    L = d3 * d4
    out_dims = (n0, n1, n2, L)
    total = n0 * n1 * n2 * L
    itemsize = jnp.dtype(x.dtype).itemsize
    sub = _sublane_multiple(x.dtype)

    # Since the op is a contiguous copy, any 2-D factorization is free.
    # Pick the widest lane axis (multiple of 128) for maximal store efficiency;
    # fall back to the flattened axis L (full-extent last dim is always legal).
    C = _widest_lane_dim(total)
    if C is None:
        C = L
    M = total // C

    # Row tile: largest sublane-aligned tile whose double-buffered in + out
    # copies (4x tile bytes) stay within a conservative VMEM budget.
    row_bytes = C * itemsize
    bm_cap = max(sub, (vmem_budget_bytes // (4 * row_bytes)) // sub * sub)
    bm = M if M <= bm_cap else bm_cap
    if bm < M:
        bm = max(sub, (bm // sub) * sub)  # keep sublane packing when tiling
    grid = (pl.cdiv(M, bm),)

    # Contiguous row-major collapse: metadata-only reshape, no data movement.
    x2 = x.reshape(M, C)

    out = pl.pallas_call(
        _copy_kernel,
        out_shape=jax.ShapeDtypeStruct((M, C), x.dtype),
        grid_spec=pltpu.PrefetchScalarGridSpec(
            num_scalar_prefetch=0,
            grid=grid,
            in_specs=[pl.BlockSpec((bm, C), lambda i: (i, 0))],
            out_specs=pl.BlockSpec((bm, C), lambda i: (i, 0)),
        ),
        compiler_params=pltpu.CompilerParams(
            dimension_semantics=("parallel",)),
    )(x2)

    # Restore the untouched leading dims (free metadata reshape).
    return out.reshape(out_dims)


if __name__ == "__main__":
    # Small shapes consistent with the module (needs dims 3 and 4 to flatten):
    # batch=2, channels=4, depth=3, spatial=16x16 -> output (2, 4, 3, 256).
    key = jax.random.PRNGKey(0)
    x = jax.random.normal(key, (2, 4, 3, 16, 16), jnp.float32)

    out = flatten_3_4(x)
    out = jax.block_until_ready(out)

    # Reference: exactly what nn.Flatten(3, 4) does on contiguous memory.
    ref = x.reshape(2, 4, 3, 16 * 16)
    assert out.shape == (2, 4, 3, 256), out.shape
    assert jnp.array_equal(out, ref), float(jnp.abs(out - ref).max())
    print("KERNEL_OK")
</pallas_src>

<mosaic_0001>
module attributes {stable_mosaic.version = 11 : i64} {
  func.func @_copy_kernel(%arg0: i32, %arg1: memref<1x6144xf32, #tpu.memory_space<vmem>>, %arg2: memref<1x6144xf32, #tpu.memory_space<vmem>>) attributes {dimension_semantics = [#tpu.dimension_semantics<parallel>], iteration_bounds = array<i64: 1>, scalar_prefetch = 0 : i64, scratch_operands = 0 : i64, tpu.core_type = #tpu.core_type<tc>, window_params = [{transform_indices = @transform_0, window_bounds = array<i64: 1, 6144>}, {transform_indices = @transform_1, window_bounds = array<i64: 1, 6144>}]} {
    %c0 = arith.constant 0 : index
    %c0_0 = arith.constant 0 : index
    %0 = vector.load %arg1[%c0, %c0_0] : memref<1x6144xf32, #tpu.memory_space<vmem>>, vector<1x6144xf32>
    %c0_1 = arith.constant 0 : index
    %c0_2 = arith.constant 0 : index
    %1 = vector.load %arg2[%c0_1, %c0_2] : memref<1x6144xf32, #tpu.memory_space<vmem>>, vector<1x6144xf32>
    tpu.vector_store %arg2[%c0_1, %c0_2], %0 {strides = array<i32>} : memref<1x6144xf32, #tpu.memory_space<vmem>>, vector<1x6144xf32>,
    return
  }
  func.func @transform_0(%arg0: i32) -> (i32, i32) {
    %c0_i32 = arith.constant 0 : i32
    %c0_i32_0 = arith.constant 0 : i32
    return %arg0, %c0_i32 : i32, i32
  }
  func.func @transform_1(%arg0: i32) -> (i32, i32) {
    %c0_i32 = arith.constant 0 : i32
    %c0_i32_0 = arith.constant 0 : i32
    return %arg0, %c0_i32 : i32, i32
  }
}

</mosaic_0001>

<bundles_post_ra>
// kernel: tpu_custom_call.1
= control target key start
LH: loop header
LB: loop body
LE: loop exit
PB: predicated region body
PF: predicated region fallthrough
CT: control target
= control target key end

     0   :  { %6 = vsyncpa [#allocation3], 0  ;;  %s112_s0 = inlined_call_operand.hbm [shape: f32[1,6144], index: 0, kind: input, shape index: {}]   ;;  %s113_s1 = inlined_call_operand.hbm [shape: f32[1,6144], index: 1, kind: output, shape index: {}]  }
   0x1   :  { %7 = vsyncpa [#allocation4], 0  ;;  %s94_s6 = smov [#allocation2]  }
   0x2   :  { %s14_s7 = sshll.u32 %s94_s6, 4  ;;  %s15_s7 = int_to_ptr.vmem [resolvable:$true] %s14_s7 }
   0x3   :  { %s58_s8 = scalar_lea.vmem %s15_s7, 768  ;;  %p63_p1 = scmp.lt.s32.totalorder %s15_s7, %s15_s7 }
   0x4   :  { %p59_p0 = scmp.ne.s32.totalorder %s15_s7, %s58_s8  ;;  %p64_p2 = scmp.lt.s32.totalorder %s58_s8, %s58_s8 }
   0x6   :  { %p65_p3 = por %p64_p2, %p63_p1 }
   0x8   :  { %p66_p4 = pnand %p65_p3, %p59_p0 }
   0xa   :  { %69 = shalt.err (!%p66_p4)
}
   0xb   :  { %17 = dma.hbm_to_vmem [thread:$0]  %s112_s0, 768, %s15_s7, [#allocation3]  }
   0xc   :  { %90 = dma.done.wait [#allocation3], 768  }
   0xd   :  { %91 = vsyncadd [#allocation3], 4294966528  ;;  %s95_s11 = smov [#allocation5]   ;;  %v21_v0 = vld [vmem:[#allocation2] sm:$0xff]  ;;  %v22_v1 = vld [vmem:[#allocation2 + $0x8] sm:$0xff] }
   0xe   :  { %s39_s12 = sshll.u32 %s95_s11, 4  ;;  %v23_v2 = vld [vmem:[#allocation2 + $0x10] sm:$0xff]  ;;  %27 = vst [vmem:[#allocation5] sm:$0xff] %v21_v0  ;;  %28 = vst [vmem:[#allocation5 + $0x8] sm:$0xff] %v22_v1  ;;  %v24_v3 = vld [vmem:[#allocation2 + $0x18] sm:$0xff]  ;;  %s40_s12 = int_to_ptr.vmem [resolvable:$true] %s39_s12 }
   0xf   :  { %29 = vst [vmem:[#allocation5 + $0x10] sm:$0xff] %v23_v2  ;;  %v25_v4 = vld [vmem:[#allocation2 + $0x20] sm:$0xff]  ;;  %v26_v5 = vld [vmem:[#allocation2 + $0x28] sm:$0xff]  ;;  %30 = vst [vmem:[#allocation5 + $0x18] sm:$0xff] %v24_v3  ;;  %s70_s13 = scalar_lea.vmem %s40_s12, 768  ;;  %p75_p6 = scmp.lt.s32.totalorder %s40_s12, %s40_s12 }
  0x10   :  { %31 = vst [vmem:[#allocation5 + $0x20] sm:$0xff] %v25_v4  ;;  %32 = vst [vmem:[#allocation5 + $0x28] sm:$0xff] %v26_v5  ;;  %p71_p5 = scmp.ne.s32.totalorder %s40_s12, %s70_s13  ;;  %p76_p7 = scmp.lt.s32.totalorder %s70_s13, %s70_s13 }
  0x12   :  { %p77_p8 = por %p76_p7, %p75_p6 }
  0x14   :  { %p78_p9 = pnand %p77_p8, %p71_p5 }
  0x16   :  { %81 = shalt.err (!%p78_p9)
}
  0x17   :  { %42 = dma.vmem_to_hbm [thread:$0]  %s40_s12, 768, %s113_s1, [#allocation4]  }
  0x18   :  { %92 = dma.done.wait [#allocation4], 768  }
  0x19   :  { %93 = vsyncadd [#allocation4], 4294966528 }
  0x1a   :  { %46 = vsyncpa [#allocation3], 1 }
  0x1b   :  { %47 = vsyncpa [#allocation4], 1 }

</bundles_post_ra>
